<compile_context>
chip_gen: v7x
topology: tpu7x:2x2x1
jax: 0.10.0
libtpu: 0.0.40
codegen_flags: <defaults>
</compile_context>

<pallas_src>
import functools
import math

import jax
import jax.numpy as jnp
from jax import lax
from jax.experimental import pallas as pl
from jax.experimental.pallas import tpu as pltpu

LN_EPS = 1e-5
_MAX_ROW_TILE = 256   # rows (B*S) per grid step for the row-tiled FF kernel


def _row_tile(n, max_tile=_MAX_ROW_TILE):
    """Largest row tile <= max_tile that divides n and is a multiple of 8
    (falls back to the full array when n is small or has no such divisor)."""
    if n <= max_tile:
        return n
    t = (max_tile // 8) * 8
    while t >= 8:
        if n % t == 0:
            return t
        t -= 8
    return n


# ----------------------------------------------------------------------------
# Kernels
# ----------------------------------------------------------------------------
def _ln_relu(y, g, be):
    # y is f32; LayerNorm (biased variance, eps inside sqrt) then affine + relu.
    mu = jnp.mean(y, axis=-1, keepdims=True)
    var = jnp.mean((y - mu) * (y - mu), axis=-1, keepdims=True)
    yn = (y - mu) * lax.rsqrt(var + LN_EPS)
    return jnp.maximum(yn * g + be, 0.0)


def _attn_block_kernel(x_ref, wqkv_ref, bqkv_ref, wo_ref, bo_ref,
                       g_ref, be_ref, o_ref, *, num_heads, scale):
    # Per batch element:
    #   qkv = x @ Wqkv + bqkv        (one fused matmul, f32 accumulate)
    #   per head: softmax(q k^T * scale) v   (heads sliced on the lane axis,
    #                                         no head split/merge transposes)
    #   out = relu(LayerNorm1(x + attn @ Wo + bo))
    x = x_ref[0]                                   # (S, D)
    d = x.shape[-1]
    dh = d // num_heads
    xf = x.astype(jnp.float32)

    qkv = jnp.dot(xf, wqkv_ref[...],
                  preferred_element_type=jnp.float32) + bqkv_ref[...]   # (S, 3D)

    outs = []
    for h in range(num_heads):                     # static loop, small H
        q = qkv[:, h * dh:(h + 1) * dh]
        k = qkv[:, d + h * dh: d + (h + 1) * dh]
        v = qkv[:, 2 * d + h * dh: 2 * d + (h + 1) * dh]
        # contract last axes directly (no explicit .T / XLU transpose)
        s = lax.dot_general(q, k, (((1,), (1,)), ((), ())),
                            preferred_element_type=jnp.float32) * scale
        m = jnp.max(s, axis=-1, keepdims=True)
        p = jnp.exp(s - m)
        p = p * pl.reciprocal(jnp.sum(p, axis=-1, keepdims=True), approx=True)
        outs.append(jnp.dot(p, v, preferred_element_type=jnp.float32))
    attn = jnp.concatenate(outs, axis=-1)          # (S, D), torch merge order

    proj = jnp.dot(attn, wo_ref[...],
                   preferred_element_type=jnp.float32) + bo_ref[...]
    y = xf + proj
    o_ref[0] = _ln_relu(y, g_ref[...], be_ref[...]).astype(o_ref.dtype)


def _ff_add_ln_relu_kernel(x_ref, w1_ref, b1_ref, w2_ref, b2_ref,
                           g_ref, be_ref, o_ref):
    # o = relu(LayerNorm2(x + relu(x @ W1 + b1) @ W2 + b2))
    x = x_ref[...]
    h = jnp.dot(x, w1_ref[...], preferred_element_type=jnp.float32) + b1_ref[...]
    h = jnp.maximum(h, 0.0)                        # f32 for the second matmul
    ff = jnp.dot(h, w2_ref[...], preferred_element_type=jnp.float32) + b2_ref[...]
    y = x.astype(jnp.float32) + ff
    o_ref[...] = _ln_relu(y, g_ref[...], be_ref[...]).astype(o_ref.dtype)


# ----------------------------------------------------------------------------
# Wrappers
# ----------------------------------------------------------------------------
def _wspec(shape):
    # full-array block, same block every grid step (weights / biases / gains
    # stay resident in VMEM across the grid — Pallas skips re-DMA)
    return pl.BlockSpec(shape, lambda i: tuple(0 for _ in shape))


def pallas_attention_block(x3, wqkv, bqkv, wo, bo, g, be, num_heads):
    # x3: (B, S, D) -> relu(LN1(x + MHA(x))) : (B, S, D)
    b, s, d = x3.shape
    d3 = wqkv.shape[1]
    dh = d // num_heads
    scale = 1.0 / math.sqrt(dh)
    return pl.pallas_call(
        functools.partial(_attn_block_kernel, num_heads=num_heads, scale=scale),
        out_shape=jax.ShapeDtypeStruct((b, s, d), x3.dtype),
        grid=(b,),
        in_specs=[pl.BlockSpec((1, s, d), lambda i: (i, 0, 0)),
                  _wspec(wqkv.shape), _wspec(bqkv.shape),
                  _wspec(wo.shape), _wspec(bo.shape),
                  _wspec(g.shape), _wspec(be.shape)],
        out_specs=pl.BlockSpec((1, s, d), lambda i: (i, 0, 0)),
        compiler_params=pltpu.CompilerParams(dimension_semantics=("parallel",)),
        cost_estimate=pl.CostEstimate(
            flops=(2 * b * s * d * d3                 # fused QKV
                   + 4 * b * num_heads * s * s * dh   # qk^T and pv
                   + 2 * b * s * d * d                # Wo
                   + 12 * b * s * d),                 # residual + LN + relu
            transcendentals=b * num_heads * s * s + b * s,
            bytes_accessed=4 * (2 * b * s * d + d * d3 + d3 + d * d + 3 * d)),
    )(x3, wqkv, bqkv, wo, bo, g, be)


def pallas_ff_add_ln_relu(x2d, w1, b1, w2, b2, g, be):
    n, d = x2d.shape
    d_ff = w1.shape[1]
    tn = _row_tile(n)
    return pl.pallas_call(
        _ff_add_ln_relu_kernel,
        out_shape=jax.ShapeDtypeStruct((n, d), x2d.dtype),
        grid=(n // tn,),
        in_specs=[pl.BlockSpec((tn, d), lambda i: (i, 0)),
                  _wspec(w1.shape), _wspec(b1.shape),
                  _wspec(w2.shape), _wspec(b2.shape),
                  _wspec(g.shape), _wspec(be.shape)],
        out_specs=pl.BlockSpec((tn, d), lambda i: (i, 0)),
        compiler_params=pltpu.CompilerParams(dimension_semantics=("parallel",)),
        cost_estimate=pl.CostEstimate(
            flops=4 * n * d * d_ff + 12 * n * d, transcendentals=n,
            bytes_accessed=4 * (2 * n * d + 2 * d * d_ff + d_ff + 5 * d)),
    )(x2d, w1, b1, w2, b2, g, be)


# ----------------------------------------------------------------------------
# EncoderLayer forward
# ----------------------------------------------------------------------------
def init_params(key, d_model, num_heads, d_ff):
    ks = jax.random.split(key, 6)
    std = 0.02

    def dense(k, din, dout):
        kw, kb = jax.random.split(k)
        return (jax.random.normal(kw, (din, dout), jnp.float32) * std,
                jax.random.normal(kb, (1, dout), jnp.float32) * std)

    wq, bq = dense(ks[0], d_model, d_model)
    wk, bk = dense(ks[1], d_model, d_model)
    wv, bv = dense(ks[2], d_model, d_model)
    wo, bo = dense(ks[3], d_model, d_model)
    w1, b1 = dense(ks[4], d_model, d_ff)
    w2, b2 = dense(ks[5], d_ff, d_model)
    return {
        # fused QKV weight: one matmul, one VMEM-resident read of x
        "wqkv": jnp.concatenate([wq, wk, wv], axis=1),
        "bqkv": jnp.concatenate([bq, bk, bv], axis=1),
        "wo": wo, "bo": bo, "w1": w1, "b1": b1, "w2": w2, "b2": b2,
        "g1": jnp.ones((1, d_model), jnp.float32),
        "be1": jnp.zeros((1, d_model), jnp.float32),
        "g2": jnp.ones((1, d_model), jnp.float32),
        "be2": jnp.zeros((1, d_model), jnp.float32),
        "num_heads": num_heads,
    }


def encoder_layer_forward(params, x):
    # x: (B, S, D)
    b, s, d = x.shape
    h = params["num_heads"]

    # --- attention sub-block: QKV + MHA + Wo + residual + LN1 + relu ------
    x1 = pallas_attention_block(x, params["wqkv"], params["bqkv"],
                                params["wo"], params["bo"],
                                params["g1"], params["be1"], h)   # (B, S, D)

    # --- FF sub-block: FF1 + relu + FF2 + residual + LN2 + relu -----------
    out2d = pallas_ff_add_ln_relu(x1.reshape(b * s, d),
                                  params["w1"], params["b1"],
                                  params["w2"], params["b2"],
                                  params["g2"], params["be2"])
    return out2d.reshape(b, s, d)


# ----------------------------------------------------------------------------
# Reference (pure jnp) for sanity checking
# ----------------------------------------------------------------------------
def encoder_layer_reference(params, x):
    b, s, d = x.shape
    h = params["num_heads"]
    dh = d // h
    x2d = x.reshape(b * s, d)

    wq = params["wqkv"][:, :d]
    wk = params["wqkv"][:, d:2 * d]
    wv = params["wqkv"][:, 2 * d:]
    bq = params["bqkv"][:, :d]
    bk = params["bqkv"][:, d:2 * d]
    bv = params["bqkv"][:, 2 * d:]

    def lin(t, w, bias):
        return t @ w + bias

    q = lin(x2d, wq, bq).reshape(b, s, h, dh).transpose(0, 2, 1, 3)
    k = lin(x2d, wk, bk).reshape(b, s, h, dh).transpose(0, 2, 1, 3)
    v = lin(x2d, wv, bv).reshape(b, s, h, dh).transpose(0, 2, 1, 3)
    sc = jnp.einsum("bhqd,bhkd->bhqk", q, k) / math.sqrt(dh)
    p = jax.nn.softmax(sc, axis=-1)
    attn = jnp.einsum("bhqk,bhkd->bhqd", p, v).transpose(0, 2, 1, 3).reshape(b * s, d)
    attn = lin(attn, params["wo"], params["bo"])

    def add_ln_relu(xx, dd, g, be):
        y = xx + dd
        mu = jnp.mean(y, axis=-1, keepdims=True)
        var = jnp.mean((y - mu) ** 2, axis=-1, keepdims=True)
        yn = (y - mu) / jnp.sqrt(var + LN_EPS)
        return jnp.maximum(yn * g + be, 0.0)

    x2d = add_ln_relu(x2d, attn, params["g1"], params["be1"])
    ff = lin(jnp.maximum(lin(x2d, params["w1"], params["b1"]), 0.0),
             params["w2"], params["b2"])
    out = add_ln_relu(x2d, ff, params["g2"], params["be2"])
    return out.reshape(b, s, d)


if __name__ == "__main__":
    B, S, D_MODEL, NUM_HEADS, D_FF = 2, 8, 32, 4, 64

    key = jax.random.PRNGKey(0)
    kx, kp = jax.random.split(key)
    x = jax.random.normal(kx, (B, S, D_MODEL), jnp.float32)
    params = init_params(kp, D_MODEL, NUM_HEADS, D_FF)

    out = encoder_layer_forward(params, x)
    out = jax.block_until_ready(out)

    ref = encoder_layer_reference(params, x)
    assert out.shape == (B, S, D_MODEL)
    # tolerance loosened slightly vs pure f32 because the softmax denominator
    # uses the approximate EUP reciprocal (pl.reciprocal(..., approx=True))
    assert jnp.allclose(out, ref, atol=2e-3, rtol=2e-3), "mismatch vs reference"

    print("KERNEL_OK")
</pallas_src>

<mosaic_0001>
module attributes {stable_mosaic.version = 11 : i64} {
  func.func @_attn_block_kernel(%arg0: i32, %arg1: memref<1x8x32xf32, #tpu.memory_space<vmem>>, %arg2: memref<32x96xf32, #tpu.memory_space<vmem>>, %arg3: memref<1x96xf32, #tpu.memory_space<vmem>>, %arg4: memref<32x32xf32, #tpu.memory_space<vmem>>, %arg5: memref<1x32xf32, #tpu.memory_space<vmem>>, %arg6: memref<1x32xf32, #tpu.memory_space<vmem>>, %arg7: memref<1x32xf32, #tpu.memory_space<vmem>>, %arg8: memref<1x8x32xf32, #tpu.memory_space<vmem>>) attributes {dimension_semantics = [#tpu.dimension_semantics<parallel>], iteration_bounds = array<i64: 2>, scalar_prefetch = 0 : i64, scratch_operands = 0 : i64, tpu.core_type = #tpu.core_type<tc>, window_params = [{transform_indices = @transform_0, window_bounds = array<i64: 1, 8, 32>}, {pipeline_mode = #tpu.pipeline_mode<synchronous>, transform_indices = @transform_1, window_bounds = array<i64: 32, 96>}, {pipeline_mode = #tpu.pipeline_mode<synchronous>, transform_indices = @transform_2, window_bounds = array<i64: 1, 96>}, {pipeline_mode = #tpu.pipeline_mode<synchronous>, transform_indices = @transform_3, window_bounds = array<i64: 32, 32>}, {pipeline_mode = #tpu.pipeline_mode<synchronous>, transform_indices = @transform_4, window_bounds = array<i64: 1, 32>}, {pipeline_mode = #tpu.pipeline_mode<synchronous>, transform_indices = @transform_5, window_bounds = array<i64: 1, 32>}, {pipeline_mode = #tpu.pipeline_mode<synchronous>, transform_indices = @transform_6, window_bounds = array<i64: 1, 32>}, {transform_indices = @transform_7, window_bounds = array<i64: 1, 8, 32>}]} {
    %c0 = arith.constant 0 : index
    %c0_0 = arith.constant 0 : index
    %c0_1 = arith.constant 0 : index
    %0 = vector.load %arg1[%c0, %c0_0, %c0_1] : memref<1x8x32xf32, #tpu.memory_space<vmem>>, vector<1x8x32xf32>
    %1 = vector.shape_cast %0 : vector<1x8x32xf32> to vector<8x32xf32>
    %c0_2 = arith.constant 0 : index
    %c0_3 = arith.constant 0 : index
    %2 = vector.load %arg2[%c0_2, %c0_3] : memref<32x96xf32, #tpu.memory_space<vmem>>, vector<32x96xf32>
    %cst = arith.constant dense<0.000000e+00> : vector<8x96xf32>
    %3 = tpu.matmul %1, %2, %cst {dimension_numbers = #tpu.dot_dimension_numbers<[1], [0], [0], [1], [0, 0, 1, 1], [], []>} : vector<8x32xf32>, vector<32x96xf32>, vector<8x96xf32> -> vector<8x96xf32>
    %c0_4 = arith.constant 0 : index
    %c0_5 = arith.constant 0 : index
    %4 = vector.load %arg3[%c0_4, %c0_5] : memref<1x96xf32, #tpu.memory_space<vmem>>, vector<1x96xf32>
    %5 = vector.broadcast %4 : vector<1x96xf32> to vector<8x96xf32>
    %6 = arith.addf %3, %5 : vector<8x96xf32>
    %7 = vector.extract_strided_slice %6 {offsets = [0, 0], sizes = [8, 8], strides = [1, 1]} : vector<8x96xf32> to vector<8x8xf32>
    %8 = vector.extract_strided_slice %6 {offsets = [0, 32], sizes = [8, 8], strides = [1, 1]} : vector<8x96xf32> to vector<8x8xf32>
    %9 = vector.extract_strided_slice %6 {offsets = [0, 64], sizes = [8, 8], strides = [1, 1]} : vector<8x96xf32> to vector<8x8xf32>
    %cst_6 = arith.constant dense<0.000000e+00> : vector<8x8xf32>
    %10 = tpu.matmul %7, %8, %cst_6 {dimension_numbers = #tpu.dot_dimension_numbers<[1], [1], [0], [0], [0, 0, 1, 0], [], []>} : vector<8x8xf32>, vector<8x8xf32>, vector<8x8xf32> -> vector<8x8xf32>
    %cst_7 = arith.constant 0.353553385 : f32
    %11 = vector.broadcast %cst_7 : f32 to vector<8x8xf32>
    %12 = arith.mulf %10, %11 : vector<8x8xf32>
    %cst_8 = arith.constant dense<0xFF800000> : vector<8xf32>
    %13 = vector.multi_reduction <maximumf>, %12, %cst_8 [1] : vector<8x8xf32> to vector<8xf32>
    %14 = vector.shape_cast %13 : vector<8xf32> to vector<8x1xf32>
    %15 = vector.broadcast %14 : vector<8x1xf32> to vector<8x8xf32>
    %16 = arith.subf %12, %15 : vector<8x8xf32>
    %17 = math.exp %16 : vector<8x8xf32>
    %cst_9 = arith.constant dense<0.000000e+00> : vector<8xf32>
    %18 = vector.multi_reduction <add>, %17, %cst_9 [1] : vector<8x8xf32> to vector<8xf32>
    %19 = vector.shape_cast %18 : vector<8xf32> to vector<8x1xf32>
    %20 = tpu.reciprocal %19 {approx = true} : vector<8x1xf32> -> vector<8x1xf32>
    %21 = vector.broadcast %20 : vector<8x1xf32> to vector<8x8xf32>
    %22 = arith.mulf %17, %21 : vector<8x8xf32>
    %cst_10 = arith.constant dense<0.000000e+00> : vector<8x8xf32>
    %23 = tpu.matmul %22, %9, %cst_10 {dimension_numbers = #tpu.dot_dimension_numbers<[1], [0], [0], [1], [0, 0, 1, 1], [], []>} : vector<8x8xf32>, vector<8x8xf32>, vector<8x8xf32> -> vector<8x8xf32>
    %24 = vector.extract_strided_slice %6 {offsets = [0, 8], sizes = [8, 8], strides = [1, 1]} : vector<8x96xf32> to vector<8x8xf32>
    %25 = vector.extract_strided_slice %6 {offsets = [0, 40], sizes = [8, 8], strides = [1, 1]} : vector<8x96xf32> to vector<8x8xf32>
    %26 = vector.extract_strided_slice %6 {offsets = [0, 72], sizes = [8, 8], strides = [1, 1]} : vector<8x96xf32> to vector<8x8xf32>
    %cst_11 = arith.constant dense<0.000000e+00> : vector<8x8xf32>
    %27 = tpu.matmul %24, %25, %cst_11 {dimension_numbers = #tpu.dot_dimension_numbers<[1], [1], [0], [0], [0, 0, 1, 0], [], []>} : vector<8x8xf32>, vector<8x8xf32>, vector<8x8xf32> -> vector<8x8xf32>
    %cst_12 = arith.constant 0.353553385 : f32
    %28 = vector.broadcast %cst_12 : f32 to vector<8x8xf32>
    %29 = arith.mulf %27, %28 : vector<8x8xf32>
    %cst_13 = arith.constant dense<0xFF800000> : vector<8xf32>
    %30 = vector.multi_reduction <maximumf>, %29, %cst_13 [1] : vector<8x8xf32> to vector<8xf32>
    %31 = vector.shape_cast %30 : vector<8xf32> to vector<8x1xf32>
    %32 = vector.broadcast %31 : vector<8x1xf32> to vector<8x8xf32>
    %33 = arith.subf %29, %32 : vector<8x8xf32>
    %34 = math.exp %33 : vector<8x8xf32>
    %cst_14 = arith.constant dense<0.000000e+00> : vector<8xf32>
    %35 = vector.multi_reduction <add>, %34, %cst_14 [1] : vector<8x8xf32> to vector<8xf32>
    %36 = vector.shape_cast %35 : vector<8xf32> to vector<8x1xf32>
    %37 = tpu.reciprocal %36 {approx = true} : vector<8x1xf32> -> vector<8x1xf32>
    %38 = vector.broadcast %37 : vector<8x1xf32> to vector<8x8xf32>
    %39 = arith.mulf %34, %38 : vector<8x8xf32>
    %cst_15 = arith.constant dense<0.000000e+00> : vector<8x8xf32>
    %40 = tpu.matmul %39, %26, %cst_15 {dimension_numbers = #tpu.dot_dimension_numbers<[1], [0], [0], [1], [0, 0, 1, 1], [], []>} : vector<8x8xf32>, vector<8x8xf32>, vector<8x8xf32> -> vector<8x8xf32>
    %41 = vector.extract_strided_slice %6 {offsets = [0, 16], sizes = [8, 8], strides = [1, 1]} : vector<8x96xf32> to vector<8x8xf32>
    %42 = vector.extract_strided_slice %6 {offsets = [0, 48], sizes = [8, 8], strides = [1, 1]} : vector<8x96xf32> to vector<8x8xf32>
    %43 = vector.extract_strided_slice %6 {offsets = [0, 80], sizes = [8, 8], strides = [1, 1]} : vector<8x96xf32> to vector<8x8xf32>
    %cst_16 = arith.constant dense<0.000000e+00> : vector<8x8xf32>
    %44 = tpu.matmul %41, %42, %cst_16 {dimension_numbers = #tpu.dot_dimension_numbers<[1], [1], [0], [0], [0, 0, 1, 0], [], []>} : vector<8x8xf32>, vector<8x8xf32>, vector<8x8xf32> -> vector<8x8xf32>
    %cst_17 = arith.constant 0.353553385 : f32
    %45 = vector.broadcast %cst_17 : f32 to vector<8x8xf32>
    %46 = arith.mulf %44, %45 : vector<8x8xf32>
    %cst_18 = arith.constant dense<0xFF800000> : vector<8xf32>
    %47 = vector.multi_reduction <maximumf>, %46, %cst_18 [1] : vector<8x8xf32> to vector<8xf32>
    %48 = vector.shape_cast %47 : vector<8xf32> to vector<8x1xf32>
    %49 = vector.broadcast %48 : vector<8x1xf32> to vector<8x8xf32>
    %50 = arith.subf %46, %49 : vector<8x8xf32>
    %51 = math.exp %50 : vector<8x8xf32>
    %cst_19 = arith.constant dense<0.000000e+00> : vector<8xf32>
    %52 = vector.multi_reduction <add>, %51, %cst_19 [1] : vector<8x8xf32> to vector<8xf32>
    %53 = vector.shape_cast %52 : vector<8xf32> to vector<8x1xf32>
    %54 = tpu.reciprocal %53 {approx = true} : vector<8x1xf32> -> vector<8x1xf32>
    %55 = vector.broadcast %54 : vector<8x1xf32> to vector<8x8xf32>
    %56 = arith.mulf %51, %55 : vector<8x8xf32>
    %cst_20 = arith.constant dense<0.000000e+00> : vector<8x8xf32>
    %57 = tpu.matmul %56, %43, %cst_20 {dimension_numbers = #tpu.dot_dimension_numbers<[1], [0], [0], [1], [0, 0, 1, 1], [], []>} : vector<8x8xf32>, vector<8x8xf32>, vector<8x8xf32> -> vector<8x8xf32>
    %58 = vector.extract_strided_slice %6 {offsets = [0, 24], sizes = [8, 8], strides = [1, 1]} : vector<8x96xf32> to vector<8x8xf32>
    %59 = vector.extract_strided_slice %6 {offsets = [0, 56], sizes = [8, 8], strides = [1, 1]} : vector<8x96xf32> to vector<8x8xf32>
    %60 = vector.extract_strided_slice %6 {offsets = [0, 88], sizes = [8, 8], strides = [1, 1]} : vector<8x96xf32> to vector<8x8xf32>
    %cst_21 = arith.constant dense<0.000000e+00> : vector<8x8xf32>
    %61 = tpu.matmul %58, %59, %cst_21 {dimension_numbers = #tpu.dot_dimension_numbers<[1], [1], [0], [0], [0, 0, 1, 0], [], []>} : vector<8x8xf32>, vector<8x8xf32>, vector<8x8xf32> -> vector<8x8xf32>
    %cst_22 = arith.constant 0.353553385 : f32
    %62 = vector.broadcast %cst_22 : f32 to vector<8x8xf32>
    %63 = arith.mulf %61, %62 : vector<8x8xf32>
    %cst_23 = arith.constant dense<0xFF800000> : vector<8xf32>
    %64 = vector.multi_reduction <maximumf>, %63, %cst_23 [1] : vector<8x8xf32> to vector<8xf32>
    %65 = vector.shape_cast %64 : vector<8xf32> to vector<8x1xf32>
    %66 = vector.broadcast %65 : vector<8x1xf32> to vector<8x8xf32>
    %67 = arith.subf %63, %66 : vector<8x8xf32>
    %68 = math.exp %67 : vector<8x8xf32>
    %cst_24 = arith.constant dense<0.000000e+00> : vector<8xf32>
    %69 = vector.multi_reduction <add>, %68, %cst_24 [1] : vector<8x8xf32> to vector<8xf32>
    %70 = vector.shape_cast %69 : vector<8xf32> to vector<8x1xf32>
    %71 = tpu.reciprocal %70 {approx = true} : vector<8x1xf32> -> vector<8x1xf32>
    %72 = vector.broadcast %71 : vector<8x1xf32> to vector<8x8xf32>
    %73 = arith.mulf %68, %72 : vector<8x8xf32>
    %cst_25 = arith.constant dense<0.000000e+00> : vector<8x8xf32>
    %74 = tpu.matmul %73, %60, %cst_25 {dimension_numbers = #tpu.dot_dimension_numbers<[1], [0], [0], [1], [0, 0, 1, 1], [], []>} : vector<8x8xf32>, vector<8x8xf32>, vector<8x8xf32> -> vector<8x8xf32>
    %75 = tpu.concatenate %23, %40, %57, %74 in 1 : vector<8x8xf32>, vector<8x8xf32>, vector<8x8xf32>, vector<8x8xf32> -> vector<8x32xf32>
    %c0_26 = arith.constant 0 : index
    %c0_27 = arith.constant 0 : index
    %76 = vector.load %arg4[%c0_26, %c0_27] : memref<32x32xf32, #tpu.memory_space<vmem>>, vector<32x32xf32>
    %cst_28 = arith.constant dense<0.000000e+00> : vector<8x32xf32>
    %77 = tpu.matmul %75, %76, %cst_28 {dimension_numbers = #tpu.dot_dimension_numbers<[1], [0], [0], [1], [0, 0, 1, 1], [], []>} : vector<8x32xf32>, vector<32x32xf32>, vector<8x32xf32> -> vector<8x32xf32>
    %c0_29 = arith.constant 0 : index
    %c0_30 = arith.constant 0 : index
    %78 = vector.load %arg5[%c0_29, %c0_30] : memref<1x32xf32, #tpu.memory_space<vmem>>, vector<1x32xf32>
    %79 = vector.broadcast %78 : vector<1x32xf32> to vector<8x32xf32>
    %80 = arith.addf %77, %79 : vector<8x32xf32>
    %81 = arith.addf %1, %80 : vector<8x32xf32>
    %c0_31 = arith.constant 0 : index
    %c0_32 = arith.constant 0 : index
    %82 = vector.load %arg6[%c0_31, %c0_32] : memref<1x32xf32, #tpu.memory_space<vmem>>, vector<1x32xf32>
    %c0_33 = arith.constant 0 : index
    %c0_34 = arith.constant 0 : index
    %83 = vector.load %arg7[%c0_33, %c0_34] : memref<1x32xf32, #tpu.memory_space<vmem>>, vector<1x32xf32>
    %cst_35 = arith.constant dense<0.000000e+00> : vector<8xf32>
    %84 = vector.multi_reduction <add>, %81, %cst_35 [1] : vector<8x32xf32> to vector<8xf32>
    %85 = vector.shape_cast %84 : vector<8xf32> to vector<8x1xf32>
    %cst_36 = arith.constant 3.200000e+01 : f32
    %86 = vector.broadcast %cst_36 : f32 to vector<8x1xf32>
    %87 = arith.divf %85, %86 : vector<8x1xf32>
    %88 = vector.broadcast %87 : vector<8x1xf32> to vector<8x32xf32>
    %89 = arith.subf %81, %88 : vector<8x32xf32>
    %90 = vector.broadcast %87 : vector<8x1xf32> to vector<8x32xf32>
    %91 = arith.subf %81, %90 : vector<8x32xf32>
    %92 = arith.mulf %89, %91 : vector<8x32xf32>
    %cst_37 = arith.constant dense<0.000000e+00> : vector<8xf32>
    %93 = vector.multi_reduction <add>, %92, %cst_37 [1] : vector<8x32xf32> to vector<8xf32>
    %94 = vector.shape_cast %93 : vector<8xf32> to vector<8x1xf32>
    %cst_38 = arith.constant 3.200000e+01 : f32
    %95 = vector.broadcast %cst_38 : f32 to vector<8x1xf32>
    %96 = arith.divf %94, %95 : vector<8x1xf32>
    %97 = vector.broadcast %87 : vector<8x1xf32> to vector<8x32xf32>
    %98 = arith.subf %81, %97 : vector<8x32xf32>
    %cst_39 = arith.constant 9.99999974E-6 : f32
    %99 = vector.broadcast %cst_39 : f32 to vector<8x1xf32>
    %100 = arith.addf %96, %99 : vector<8x1xf32>
    %101 = math.rsqrt %100 : vector<8x1xf32>
    %102 = vector.broadcast %101 : vector<8x1xf32> to vector<8x32xf32>
    %103 = arith.mulf %98, %102 : vector<8x32xf32>
    %104 = vector.broadcast %82 : vector<1x32xf32> to vector<8x32xf32>
    %105 = arith.mulf %103, %104 : vector<8x32xf32>
    %106 = vector.broadcast %83 : vector<1x32xf32> to vector<8x32xf32>
    %107 = arith.addf %105, %106 : vector<8x32xf32>
    %cst_40 = arith.constant 0.000000e+00 : f32
    %108 = vector.broadcast %cst_40 : f32 to vector<8x32xf32>
    %109 = arith.maximumf %107, %108 : vector<8x32xf32>
    %c0_41 = arith.constant 0 : index
    %c0_42 = arith.constant 0 : index
    %c0_43 = arith.constant 0 : index
    %110 = vector.load %arg8[%c0_41, %c0_42, %c0_43] : memref<1x8x32xf32, #tpu.memory_space<vmem>>, vector<1x8x32xf32>
    %111 = vector.shape_cast %110 : vector<1x8x32xf32> to vector<8x32xf32>
    %112 = vector.shape_cast %109 : vector<8x32xf32> to vector<1x8x32xf32>
    tpu.vector_store %arg8[%c0_41, %c0_42, %c0_43], %112 {strides = array<i32>} : memref<1x8x32xf32, #tpu.memory_space<vmem>>, vector<1x8x32xf32>,
    return
  }
  func.func @transform_0(%arg0: i32) -> (i32, i32, i32) {
    %c0_i32 = arith.constant 0 : i32
    %c0_i32_0 = arith.constant 0 : i32
    %c0_i32_1 = arith.constant 0 : i32
    return %arg0, %c0_i32, %c0_i32_0 : i32, i32, i32
  }
  func.func @transform_1(%arg0: i32) -> (i32, i32) {
    %c0_i32 = arith.constant 0 : i32
    %c0_i32_0 = arith.constant 0 : i32
    %c0_i32_1 = arith.constant 0 : i32
    return %c0_i32, %c0_i32_0 : i32, i32
  }
  func.func @transform_2(%arg0: i32) -> (i32, i32) {
    %c0_i32 = arith.constant 0 : i32
    %c0_i32_0 = arith.constant 0 : i32
    %c0_i32_1 = arith.constant 0 : i32
    return %c0_i32, %c0_i32_0 : i32, i32
  }
  func.func @transform_3(%arg0: i32) -> (i32, i32) {
    %c0_i32 = arith.constant 0 : i32
    %c0_i32_0 = arith.constant 0 : i32
    %c0_i32_1 = arith.constant 0 : i32
    return %c0_i32, %c0_i32_0 : i32, i32
  }
  func.func @transform_4(%arg0: i32) -> (i32, i32) {
    %c0_i32 = arith.constant 0 : i32
    %c0_i32_0 = arith.constant 0 : i32
    %c0_i32_1 = arith.constant 0 : i32
    return %c0_i32, %c0_i32_0 : i32, i32
  }
  func.func @transform_5(%arg0: i32) -> (i32, i32) {
    %c0_i32 = arith.constant 0 : i32
    %c0_i32_0 = arith.constant 0 : i32
    %c0_i32_1 = arith.constant 0 : i32
    return %c0_i32, %c0_i32_0 : i32, i32
  }
  func.func @transform_6(%arg0: i32) -> (i32, i32) {
    %c0_i32 = arith.constant 0 : i32
    %c0_i32_0 = arith.constant 0 : i32
    %c0_i32_1 = arith.constant 0 : i32
    return %c0_i32, %c0_i32_0 : i32, i32
  }
  func.func @transform_7(%arg0: i32) -> (i32, i32, i32) {
    %c0_i32 = arith.constant 0 : i32
    %c0_i32_0 = arith.constant 0 : i32
    %c0_i32_1 = arith.constant 0 : i32
    return %arg0, %c0_i32, %c0_i32_0 : i32, i32, i32
  }
}

</mosaic_0001>

<bundles_post_ra>
// kernel: tpu_custom_call.1
= control target key start
LH: loop header
LB: loop body
LE: loop exit
PB: predicated region body
PF: predicated region fallthrough
CT: control target
= control target key end

     0   :  { %12 = vsyncpa [#allocation3], 0  ;;  %s2093_s0 = inlined_call_operand.hbm [shape: f32[2,8,32], index: 0, kind: input, shape index: {}]   ;;  %s2094_s1 = inlined_call_operand.hbm [shape: f32[32,96], index: 1, kind: input, shape index: {}]   ;;  %s2095_s2 = inlined_call_operand.vmem [shape: f32[1,96], index: 2, kind: input, shape index: {}]   ;;  %s2096_s3 = inlined_call_operand.hbm [shape: f32[32,32], index: 3, kind: input, shape index: {}]   ;;  %s2097_s4 = inlined_call_operand.vmem [shape: f32[1,32], index: 4, kind: input, shape index: {}]   ;;  %s2098_s5 = inlined_call_operand.vmem [shape: f32[1,32], index: 5, kind: input, shape index: {}]   ;;  %s2099_s6 = inlined_call_operand.vmem [shape: f32[1,32], index: 6, kind: input, shape index: {}]   ;;  %s2100_s7 = inlined_call_operand.hbm [shape: f32[2,8,32], index: 7, kind: output, shape index: {}]  }
   0x1   :  { %14 = vsyncpa [#allocation3 + $0x1], 0 }
   0x2   :  { %15 = vsyncpa [#allocation6], 0 }
   0x3   :  { %16 = vsyncpa [#allocation4], 0 }
   0x4   :  { %18 = vsyncpa [#allocation4 + $0x1], 0  ;;  %s1769_s24 = smov 0   ;;  %s1771_s25 = smov 0  }
   0x5   :  { %s1773_s26 = smov 0   ;;  %s1775_s27 = smov 0  }
   0x6 LB: > { %s1790_s28 = sadd.s32 4294967295, %s1704_s27   ;;  %s1310_s29 = sadd.s32 4294967294, %s1704_s27   ;;  %s1704_s27 = sphi %s1775_s27, %s2120_s27   ;;  %s1700_s26 = sphi %s1773_s26, %s2119_s26   ;;  %s1696_s25 = sphi %s1771_s25, %s2118_s25   ;;  %s1692_s24 = sphi %s1769_s24, %s2117_s24  }
   0x7   : > { %p44_p0 = scmp.ne.s32.totalorder %s1696_s25, %s1692_s24  ;;  %p2101_p1 = scmp.eq.s32.totalorder %s1790_s28, 0 }
   0x8   : > { %p200_p3 = scmp.eq.s32.totalorder %s1310_s29, 1  ;;  %p1311_p5 = scmp.ge.s32.totalorder %s1704_s27, 1 }
   0x9   : > { %p1799_p4 = por %p2101_p1, %p44_p0  ;;  %p207_p7 = scmp.lt.s32.totalorder %s1704_s27, 3 }
   0xa   : > { %p1804_p6 = por %p200_p3, %p44_p0  ;;  %s1706_s10 = smov [#allocation5]  }
   0xb   : > { %s2104_s30 = scalar_select %p1799_p4, 1, 0 }
   0xc   : > { %s2105_s8 = scalar_select %p1804_p6, 1, 0 }
   0xd   : > { %p1809_p8 = pnand %p1311_p5, %p207_p7  ;;  %s219_s11 = sshll.u32 %s1706_s10, 4  ;;  %s1813_s11 = int_to_ptr.vmem [resolvable:$true] %s219_s11 }
   0xe   : > { %s1707_s13 = smov [#allocation7]   ;;  %s1548_s17 = scalar_lea.hbm %s2094_s1, 512 }
   0xf   : > { %p1456_p9 = pneg %p1809_p8  ;;  %s235_s14 = sshll.u32 %s1707_s13, 4  ;;  %s1824_s14 = int_to_ptr.vmem [resolvable:$true] %s235_s14 }
  0x10   : > { %p1549_p12 = scmp.ne.s32.totalorder %s2094_s1, %s1548_s17  ;;  %p1555_p5 = scmp.lt.u32.totalorder %s1548_s17, %s2094_s1 }
  0x11   : > { %p1820_p11 = pnand %p1456_p9, %p2101_p1 }
  0x13   : > { %p1550_p13 = pneg %p1820_p11 }
  0x15   : > { %p1551_p0 = pnand %p1550_p13, %p1549_p12 }
  0x17   : > { %p1552_p3 = pneg %p1551_p0 }
  0x19   : > { %p1557_p7 = pnand %p1555_p5, %p1552_p3 }
  0x1b   : > { %1560 = shalt.err (!%p1557_p7)
}
  0x1c   : > { %s1561_s22 = scalar_lea.vmem %s1813_s11, 512  ;;  %p1569_p2 = scmp.lt.s32.totalorder %s1813_s11, %s1813_s11 }
  0x1d   : > { %p1562_p9 = scmp.ne.s32.totalorder %s1813_s11, %s1561_s22  ;;  %p1570_p12 = scmp.lt.s32.totalorder %s1561_s22, %s1561_s22 }
  0x1f   : > { %p1564_p10 = pnand %p1562_p9, %p1550_p13  ;;  %p1571_p0 = por %p1570_p12, %p1569_p2 }
  0x21   : > { %p1565_p1 = pneg %p1564_p10 }
  0x23   : > { %p1572_p6 = pnand %p1571_p0, %p1565_p1 }
  0x25   : > { %1575 = shalt.err (!%p1572_p6)
}
  0x26   : > { %s1708_s23 = smov 128   ;;  %s1709_s29 = smov 8  }
  0x27   : > { %1459 = dma.hbm_to_vmem [thread:$0]  (!%p1820_p11), %s2094_s1, 512, %s1813_s11, [#allocation6], %s1708_s23, %s1708_s23, %s1709_s29  }
  0x28   : > { %s1576_s17 = scalar_lea.hbm %s2096_s3, 512 }
  0x29   : > { %p1577_p2 = scmp.ne.s32.totalorder %s2096_s3, %s1576_s17  ;;  %p1583_p10 = scmp.lt.u32.totalorder %s1576_s17, %s2096_s3 }
  0x2b   : > { %p1579_p1 = pnand %p1577_p2, %p1550_p13 }
  0x2d   : > { %p1580_p6 = pneg %p1579_p1 }
  0x2f   : > { %p1585_p3 = pnand %p1583_p10, %p1580_p6 }
  0x31   : > { %1588 = shalt.err (!%p1585_p3)
}
  0x32   : > { %s1589_s11 = scalar_lea.vmem %s1824_s14, 512  ;;  %p1597_p12 = scmp.lt.s32.totalorder %s1824_s14, %s1824_s14 }
  0x33   : > { %p1590_p5 = scmp.ne.s32.totalorder %s1824_s14, %s1589_s11  ;;  %p1598_p0 = scmp.lt.s32.totalorder %s1589_s11, %s1589_s11 }
  0x35   : > { %p1592_p7 = pnand %p1590_p5, %p1550_p13  ;;  %p1599_p2 = por %p1598_p0, %p1597_p12 }
  0x37   : > { %p1593_p9 = pneg %p1592_p7 }
  0x39   : > { %p1600_p1 = pnand %p1599_p2, %p1593_p9 }
  0x3b   : > { %1603 = shalt.err (!%p1600_p1)
}
  0x3c   : > { %1462 = dma.hbm_to_vmem [thread:$0]  (!%p1820_p11), %s2096_s3, 512, %s1824_s14, [#allocation6], %s1708_s23, %s1708_s23, %s1709_s29  }
  0x3d   : > { %s1879_s13 = sadd.s32 1, %s1704_s27   ;;  %s31_s12 = sadd.s32 1, %s1700_s26 }
  0x3e   : > { %s28_s15 = ssub.s32 %s1704_s27, %s1879_s13  ;;  %p38_p13 = scmp.ne.s32.totalorder %s1700_s26, %s1696_s25 }
  0x3f   : > { %p29_p6 = scmp.eq.s32.totalorder %s28_s15, 0  ;;  %p39_p10 = scmp.eq.s32.totalorder %s1704_s27, 0 }
  0x40   : > { %p2108_p3 = scmp.eq.s32.totalorder %s1790_s28, 1  ;;  %p1473_p7 = scmp.lt.s32.totalorder %s1704_s27, 2 }
  0x41   : > { %s1895_s17 = scalar_select %p29_p6, %s1700_s26, %s31_s12  }
  0x42   : > { %p1889_p5 = por %p2108_p3, %p38_p13  ;;  %p40_p9 = por %p39_p10, %p38_p13 }
  0x43   : > { %s258_s18 = sand.u32 1, %s1700_s26   ;;  %s1316_s14 = sshll.u32 %s1704_s27, 7 }
  0x44   : > { %s2109_s16 = scalar_select %p1889_p5, 1, 0 }
  0x45   : > { %s1315_s19 = sshll.u32 %s258_s18, 3  ;;  %s1902_s20 = scalar_lea.hbm %s2093_s0, %s1316_s14 }
  0x46   : > { %s262_s21 = scalar_lea.vmem [#allocation2], %s1315_s19  ;;  %p1906_p11 = pnand %p1473_p7, %p40_p9 }
  0x47   : > { %s269_s11 = sshll.u32 %s262_s21, 4  ;;  %s259_s10 = scalar_lea.sflag [#allocation3], %s258_s18  ;;  %s1904_s11 = int_to_ptr.vmem [resolvable:$true] %s269_s11 }
  0x48   : > { %s1604_s12 = scalar_lea.hbm %s1902_s20, 128  ;;  %p1606_p0 = pneg %p1906_p11 }
  0x49   : > { %p1605_p12 = scmp.ne.s32.totalorder %s1902_s20, %s1604_s12  ;;  %s1609_s14 = scalar_lea.hbm %s2093_s0, 256 }
  0x4a   : > { %p1610_p13 = scmp.lt.u32.totalorder %s1902_s20, %s2093_s0  ;;  %p1611_p6 = scmp.lt.u32.totalorder %s1609_s14, %s1604_s12 }
  0x4b   : > { %p1607_p2 = pnand %p1606_p0, %p1605_p12  ;;  %p1613_p3 = scmp.lt.u32.totalorder %s1604_s12, %s1902_s20 }
  0x4c   : > { %p1612_p10 = por %p1611_p6, %p1610_p13 }
  0x4d   : > { %p1608_p1 = pneg %p1607_p2 }
  0x4e   : > { %p1614_p7 = por %p1613_p3, %p1612_p10 }
  0x50   : > { %p1615_p9 = pnand %p1614_p7, %p1608_p1 }
  0x52   : > { %1618 = shalt.err (!%p1615_p9)
}
  0x53   : > { %s1619_s18 = scalar_lea.vmem %s1904_s11, 128  ;;  %s1710_s21 = smov [#allocation2]  }
  0x54   : > { %p1620_p12 = scmp.ne.s32.totalorder %s1904_s11, %s1619_s18  ;;  %s1624_s15 = sshll.u32 %s1710_s21, 4  ;;  %s1625_s15 = int_to_ptr.vmem [resolvable:$false] %s1624_s15 }
  0x55   : > { %s1626_s19 = scalar_lea.vmem %s1625_s15, 256  ;;  %p1627_p4 = scmp.lt.s32.totalorder %s1904_s11, %s1625_s15 }
  0x56   : > { %p1622_p2 = pnand %p1620_p12, %p1606_p0  ;;  %p1628_p13 = scmp.lt.s32.totalorder %s1626_s19, %s1619_s18 }
  0x58   : > { %p1623_p5 = pneg %p1622_p2  ;;  %p1629_p6 = por %p1628_p13, %p1627_p4 }
  0x5a   : > { %p1630_p10 = pnand %p1629_p6, %p1623_p5 }
  0x5c   : > { %1633 = shalt.err (!%p1630_p10)
}
  0x5d   : > { %1466 = dma.hbm_to_vmem [thread:$0]  (!%p1906_p11), %s1902_s20, 128, %s1904_s11, %s259_s10  }
  0x5e   : > { %278 = sbr.rel (%p1809_p8) target bundleno = 2428 (0x97c), region = 48  ;;  %s1938_s12 = sand.u32 (!%p1809_p8), 1, %s1696_s25  }
  0x5f   : > { %s1318_s14 = sshll.u32 (!%p1809_p8), %s1938_s12, 3  ;;  %s281_s23 = scalar_lea.sflag (!%p1809_p8), [#allocation3], %s1938_s12 }
  0x60   : > { %s284_s29 = scalar_lea.vmem (!%p1809_p8), [#allocation2], %s1318_s14  ;;  %p2111_p4 = scmp.ne.s32.totalorder (!%p1809_p8), %s2104_s30, 0 }
  0x65   : > { %1679 = dma.done.wait (%p2111_p4), %s281_s23, 128  }
  0x66   : > { %1681 = vsyncadd (%p2111_p4), %s281_s23, 4294967168  ;;  %p2112_p5 = scmp.eq.s32.totalorder %s1790_s28, 0 }
  0x68   : > { %1683 = dma.done.wait (%p2112_p5), [#allocation6], 1024   ;;  %p2113_p8 = pmov %p2112_p5 }
  0x69   : > { %v1711_v0 = vmov 0.0|0.0   ;;  %vm1712_vm0 = vmmov 0   ;;  %v1713_v1 = vmov 0.0   ;;  %v324_v2 = vld [vmem:[#allocation5] sm:$0xff]  ;;  %v325_v3 = vld [vmem:[#allocation5 + $0x8] sm:$0xff]  ;;  %v326_v4 = vld [vmem:[#allocation5 + $0x10] sm:$0xff] }
  0x6a   : > { %1685 = vsyncadd (%p2113_p8), [#allocation6], 4294966272  ;;  %1432 = vmatprep.subr.bf16.mxu0 %v1711_v0  ;;  %1378 = vmatprep.mubr.msk.f32.mxu0 %vm1712_vm0, %v1713_v1  ;;  %v1433_v5 = vpack.c.bf16 %v325_v3, %v324_v2  ;;  %v327_v6 = vld [vmem:[#allocation5 + $0x18] sm:$0xff]  ;;  %vm335_vm1 = vcmask 261120   ;;  %v1322_v9 = vld [vmem:[%s2095_s2] ss:$0 sm:$0xff] }
  0x6b   : > { %1381 = vmatprep.subr.mxu1 %v1713_v1  ;;  %1383 = vmatprep.mubr.msk.f32.mxu1 %vm1712_vm0, %v1713_v1  ;;  %v1436_v7 = vpack.c.bf16 %v327_v6, %v326_v4  ;;  %v1959_v8 = vld [vmem:[%s284_s29] sm:$0xff]  ;;  %s1714_s20 = smov 64   ;;  %s1715_s11 = smov 96   ;;  %vm412_vm2 = vcmask 64512   ;;  %vm1086_vm3 = vcmask 130048   ;;  %vm1088_vm4 = vcmask 195584  }
  0x6c   : > { %1434 = vmatpush3.bf16.msra.mxu0 %v1433_v5  ;;  %s1716_s22 = smov 88   ;;  %s1717_s10 = smov 120  }
  0x6d   : > { %1435 = vmatprep.subr.bf16.mxu0 %v1711_v0  ;;  %s1718_s18 = smov 80   ;;  %s1719_s21 = smov 72  }
  0x6e   : > { %s1720_s15 = smov 112   ;;  %s1721_s19 = smov 104  }
  0x6f   : > { %s1722_s23 = smov 56   ;;  %s1723_s29 = smov 48  }
  0x70   : > { %1437 = vmatpush3.bf16.msra.mxu0 %v1436_v7  ;;  %s1724_s30 = smov 40   ;;  %s1725_s9 = smov 8  }
  0x71   : > { %1401 = vmatprep.subr.mxu0 %v1713_v1  ;;  %p2114_p0 = scmp.ne.s32.totalorder %s2109_s16, 0 }
  0x73   : > { %1379 = vmatmul.mubr.msk.f32.vlgmr.msra.gmra.mrb[0].mxu0 %vm335_vm1, %v1959_v8 }
  0x74   : > { %1403 = vmatprep.mubr.msk.f32.mxu0 %vm1712_vm0, %v1713_v1 }
 0x146   : > { %v405_v10 = vpop.f32.mrb[0].mxu0 }
 0x147   : > { %v1969_v11 = vadd.f32 %v1322_v9, %v405_v10  ;;  %v1380_v12 = vpop.f32.mrb[1].mxu0 }
 0x149   : > { %499 = vrot.lane.b32.xlu1 %v1969_v11, %s1714_s20  ;;  %410 = vrot.lane.b32.xlu0 %v1969_v11, %s1715_s11  ;;  %s1726_s20 = smov 16   ;;  %s1727_s11 = smov 24  }
 0x14d   : > { %577 = vrot.lane.b32.xlu1 %v1969_v11, %s1716_s22  ;;  %s1208_s22 = scalar_lea.sflag [#allocation4], %s1938_s12 }
 0x151   : > { %575 = vrot.lane.b32.xlu1 %v1969_v11, %s1717_s10 }
 0x155   : > { %743 = vrot.lane.b32.xlu1 %v1969_v11, %s1718_s18 }
 0x1bb   : > { %v500_v13 = vpop.permute.xlu1 %499  ;;  %v411_v14 = vpop.permute.xlu0 %410 }
 0x1bc   : > { %1382 = vmatpush3.xpose.msk.msra.mxu1 %vm412_vm2, %v411_v14  ;;  %v1091_v14 = vld [vmem:[#allocation7 + $0x8] sm:$0xff] }
 0x1bd   : > { %1386 = vmatprep.subr.mxu1 %v1713_v1 }
 0x1bf   : > { %v578_v15 = vpop.permute.xlu1 %577  ;;  %1384 = vmatmul.mubr.msk.f32.vlgmr.msra.gmra.mrb[0].mxu1 %vm412_vm2, %v1969_v11 }
 0x1c0   : > { %1387 = vmatpush3.msra.mxu1 %v500_v13  ;;  %1388 = vmatprep.mubr.msk.f32.mxu1 %vm1712_vm0, %v1713_v1  ;;  %v1090_v13 = vld [vmem:[#allocation7] sm:$0xff] }
 0x1c1   : > { %1391 = vmatprep.subr.mxu1 %v1713_v1 }
 0x1c3   : > { %v576_v16 = vpop.permute.xlu1 %575 }
 0x1c7   : > { %v744_v17 = vpop.permute.xlu1 %743 }
 0x1c8   : > { %1402 = vmatpush3.xpose.msk.msra.mxu0 %vm412_vm2, %v744_v17  ;;  %v1093_v17 = vld [vmem:[#allocation7 + $0x18] sm:$0xff] }
 0x1c9   : > { %1411 = vmatprep.subr.mxu0 %v1713_v1 }
 0x292   : > { %v483_v18 = vpop.f32.mrb[0].mxu1 }
 0x293   : > { %v487_v19 = vmul.f32 0.35355338, %v483_v18  ;;  %v1385_v20 = vpop.f32.mrb[1].mxu1 }
 0x295   : > { %v488_v21 = vsel %vm412_vm2, %v487_v19, -inf }
 0x296   : > { %489 = vmax.xlane.f32.xlu0 %v488_v21 }
 0x2ac   : > { %909 = vrot.lane.b32.xlu0 %v1969_v11, %s1719_s21 }
 0x323   : > { %v490_v22 = vpop.xlane.xlu0 %489 }
 0x324   : > { %v491_v23 = vsub.f32 %v487_v19, %v490_v22 }
 0x326   : > { %v492_v24 = vmul.f32 1.442695, %v491_v23 }
 0x327   : > { %v910_v29 = vpop.permute.xlu0 %909 }
 0x328   : > { %1530 = vpow2.f32 %v492_v24 }
 0x332   : > { %v1531_v25 = vpop.eup %1530 }
 0x333   : > { %v494_v26 = vsel %vm412_vm2, %v1531_v25, 0.0 }
 0x334   : > { %495 = vadd.xlane.f32.xlu1 %v494_v26 }
 0x345   : > { %741 = vrot.lane.b32.xlu1 %v1969_v11, %s1720_s15 }
 0x349   : > { %907 = vrot.lane.b32.xlu1 %v1969_v11, %s1721_s19 }
 0x3c1   : > { %v496_v27 = vpop.xlane.xlu1 %495 }
 0x3c2   : > { %1532 = vrcp.f32 %v496_v27 }
 0x3c5   : > { %v742_v28 = vpop.permute.xlu1 %741 }
 0x3c6   : > { %1404 = vmatmul.mubr.msk.f32.vlgmr.msra.gmra.mrb[2].mxu0 %vm412_vm2, %v742_v28 }
 0x3c7   : > { %1412 = vmatpush3.xpose.msk.msra.mxu0 %vm412_vm2, %v910_v29  ;;  %1413 = vmatprep.mubr.msk.f32.mxu0 %vm1712_vm0, %v1713_v1  ;;  %v1336_v29 = vld [vmem:[%s2097_s4] ss:$0 sm:$0xff] }
 0x3c8   : > { %1438 = vmatprep.subr.bf16.mxu0 %v1711_v0 }
 0x3c9   : > { %v908_v30 = vpop.permute.xlu1 %907 }
 0x3ca   : > { %1414 = vmatmul.mubr.msk.f32.vlgmr.msra.gmra.mrb[4].mxu0 %vm412_vm2, %v908_v30 }
 0x3cb   : > { %1429 = vmatprep.mubr.msk.f32.mxu0 %vm1712_vm0, %v1713_v1 }
 0x3cc   : > { %v1533_v31 = vpop.eup %1532 }
 0x3cd   : > { %v498_v32 = vmul.f32 %v1533_v31, %v1531_v25 }
 0x3cf   : > { %1389 = vmatmul.mubr.msk.f32.vlgmr.msra.gmra.mrb[2].mxu1 %vm412_vm2, %v498_v32 }
 0x3d0   : > { %1392 = vmatpush3.xpose.msk.msra.mxu1 %vm412_vm2, %v578_v15  ;;  %1393 = vmatprep.mubr.msk.f32.mxu1 %vm1712_vm0, %v1713_v1  ;;  %v1439_v15 = vpack.c.bf16 %v1091_v14, %v1090_v13 }
 0x3d1   : > { %1396 = vmatprep.subr.mxu1 %v1713_v1 }
 0x3d2   : > { %1440 = vmatpush3.bf16.msra.mxu0 %v1439_v15 }
 0x3d3   : > { %1394 = vmatmul.mubr.msk.f32.vlgmr.msra.gmra.mrb[4].mxu1 %vm412_vm2, %v576_v16  ;;  %1441 = vmatprep.subr.bf16.mxu0 %v1711_v0  ;;  %v1092_v16 = vld [vmem:[#allocation7 + $0x10] sm:$0xff] }
 0x3d4   : > { %1398 = vmatprep.mubr.msk.f32.mxu1 %vm1712_vm0, %v1713_v1  ;;  %v1442_v18 = vpack.c.bf16 %v1093_v17, %v1092_v16 }
 0x3d6   : > { %1443 = vmatpush3.bf16.msra.mxu0 %v1442_v18 }
 0x499   : > { %v815_v33 = vpop.f32.mrb[2].mxu0 }
 0x49a   : > { %v819_v34 = vmul.f32 0.35355338, %v815_v33  ;;  %v1405_v35 = vpop.f32.mrb[3].mxu0 }
 0x49c   : > { %v820_v36 = vsel %vm412_vm2, %v819_v34, -inf }
 0x49d   : > { %821 = vmax.xlane.f32.xlu0 %v820_v36  ;;  %v981_v37 = vpop.f32.mrb[4].mxu0 }
 0x49e   : > { %v1415_v38 = vpop.f32.mrb[5].mxu0  ;;  %v985_v44 = vmul.f32 0.35355338, %v981_v37 }
 0x4a0   : > { %v986_v46 = vsel %vm412_vm2, %v985_v44, -inf }
 0x4a2   : > { %v2007_v39 = vpop.f32.mrb[2].mxu1 }
 0x4a3   : > { %v1390_v40 = vpop.f32.mrb[3].mxu1 }
 0x4a6   : > { %v649_v41 = vpop.f32.mrb[4].mxu1 }
 0x4a7   : > { %v653_v42 = vmul.f32 0.35355338, %v649_v41  ;;  %v1395_v43 = vpop.f32.mrb[5].mxu1 }
 0x4a9   : > { %v654_v45 = vsel %vm412_vm2, %v653_v42, -inf }
 0x4aa   : > { %655 = vmax.xlane.f32.xlu1 %v654_v45  ;;  %v1339_v45 = vld [vmem:[%s2099_s6] ss:$0 sm:$0xff] }
 0x4ae   : > { %987 = vmax.xlane.f32.xlu1 %v986_v46 }
 0x52a   : > { %v822_v47 = vpop.xlane.xlu0 %821 }
 0x52b   : > { %v823_v48 = vsub.f32 %v819_v34, %v822_v47 }
 0x52d   : > { %v824_v49 = vmul.f32 1.442695, %v823_v48 }
 0x52f   : > { %1534 = vpow2.f32 %v824_v49 }
 0x537   : > { %v656_v50 = vpop.xlane.xlu1 %655 }
 0x538   : > { %v657_v58 = vsub.f32 %v653_v42, %v656_v50 }
 0x539   : > { %v1535_v51 = vpop.eup %1534 }
 0x53a   : > { %v826_v52 = vsel %vm412_vm2, %v1535_v51, 0.0  ;;  %v658_v59 = vmul.f32 1.442695, %v657_v58 }
 0x53b   : > { %827 = vadd.xlane.f32.xlu1 %v826_v52  ;;  %v988_v53 = vpop.xlane.xlu1 %987 }
 0x53c   : > { %v989_v54 = vsub.f32 %v985_v44, %v988_v53 }
 0x53e   : > { %v990_v55 = vmul.f32 1.442695, %v989_v54 }
 0x540   : > { %1536 = vpow2.f32 %v990_v55 }
 0x541   : > { %1538 = vpow2.f32 %v658_v59 }
 0x54a   : > { %v1537_v56 = vpop.eup %1536 }
 0x54b   : > { %v992_v57 = vsel %vm412_vm2, %v1537_v56, 0.0  ;;  %v1539_v60 = vpop.eup %1538 }
 0x54c   : > { %665 = vrot.lane.b32.xlu1 %v1969_v11, %s1722_s23  ;;  %993 = vadd.xlane.f32.xlu0 %v992_v57  ;;  %v660_v61 = vsel %vm412_vm2, %v1539_v60, 0.0  ;;  %s1341_s23 = sshll.u32 %s1790_s28, 7  ;;  %s1728_s28 = smov [#allocation8]  }
 0x562   : > { %831 = vrot.lane.b32.xlu0 %v1969_v11, %s1723_s29  ;;  %s322_s29 = scalar_lea.vmem [#allocation8], %s1318_s14  ;;  %s1638_s14 = sshll.u32 %s1728_s28, 4  ;;  %s1639_s14 = int_to_ptr.vmem [resolvable:$false] %s1638_s14 }
 0x563   : > { %s1640_s18 = scalar_lea.vmem %s1639_s14, 256 }
 0x570   : > { %661 = vadd.xlane.f32.xlu1 %v660_v61 }
 0x581   : > { %997 = vrot.lane.b32.xlu1 %v1969_v11, %s1724_s30  ;;  %s1221_s30 = sshll.u32 %s322_s29, 4  ;;  %s2050_s30 = int_to_ptr.vmem [resolvable:$true] %s1221_s30 }
 0x582   : > { %s1634_s10 = scalar_lea.vmem %s2050_s30, 128  ;;  %p1641_p7 = scmp.lt.s32.totalorder %s2050_s30, %s1639_s14 }
 0x583   : > { %p1635_p11 = scmp.ne.s32.totalorder %s2050_s30, %s1634_s10  ;;  %p1642_p9 = scmp.lt.s32.totalorder %s1640_s18, %s1634_s10 }
 0x585   : > { %p1636_p1 = pnand %p1635_p11, %p2114_p0  ;;  %p1643_p12 = por %p1642_p9, %p1641_p7 }
 0x587   : > { %p1637_p3 = pneg %p1636_p1 }
 0x589   : > { %p1644_p2 = pnand %p1643_p12, %p1637_p3 }
 0x5c8   : > { %v828_v62 = vpop.xlane.xlu1 %827 }
 0x5cc   : > { %v666_v63 = vpop.permute.xlu1 %665 }
 0x5cd   : > { %1397 = vmatpush3.msra.mxu1 %v666_v63 }
 0x5ce   : > { %1406 = vmatprep.subr.mxu1 %v1713_v1 }
 0x5d9   : > { %v994_v3 = vpop.xlane.xlu0 %993 }
 0x5dd   : > { %v832_v7 = vpop.permute.xlu0 %831 }
 0x5fd   : > { %v662_v2 = vpop.xlane.xlu1 %661 }
 0x5fe   : > { %1540 = vrcp.f32 %v662_v2 }
 0x5ff   : > { %1542 = vrcp.f32 %v828_v62 }
 0x600   : > { %1544 = vrcp.f32 %v994_v3 }
 0x601   : > { %v998_v11 = vpop.permute.xlu1 %997 }
 0x608   : > { %v1541_v4 = vpop.eup %1540 }
 0x609   : > { %v664_v5 = vmul.f32 %v1541_v4, %v1539_v60  ;;  %v1543_v6 = vpop.eup %1542 }
 0x60a   : > { %v830_v9 = vmul.f32 %v1543_v6, %v1535_v51  ;;  %v1545_v10 = vpop.eup %1544 }
 0x60b   : > { %1399 = vmatmul.mubr.msk.f32.vlgmr.msra.gmra.mrb[6].mxu1 %vm412_vm2, %v664_v5  ;;  %v996_v12 = vmul.f32 %v1545_v10, %v1537_v56 }
 0x60c   : > { %1407 = vmatpush3.msra.mxu1 %v832_v7  ;;  %1408 = vmatprep.mubr.msk.f32.mxu1 %vm1712_vm0, %v1713_v1 }
 0x60d   : > { %1416 = vmatprep.subr.mxu1 %v1713_v1 }
 0x60f   : > { %1409 = vmatmul.mubr.msk.f32.vlgmr.msra.gmra.mrb[8].mxu1 %vm412_vm2, %v830_v9 }
 0x610   : > { %1417 = vmatpush3.msra.mxu1 %v998_v11  ;;  %1418 = vmatprep.mubr.msk.f32.mxu1 %vm1712_vm0, %v1713_v1 }
 0x613   : > { %1419 = vmatmul.mubr.msk.f32.vlgmr.msra.gmra.mrb[10].mxu1 %vm412_vm2, %v996_v12 }
 0x6de   : > { %v737_v19 = vpop.f32.mrb[6].mxu1 }
 0x6df   : > { %1074 = vrot.lane.b32.xlu1 %v737_v19, %s1725_s9  ;;  %v1400_v20 = vpop.f32.mrb[7].mxu1 }
 0x6e2   : > { %v903_v21 = vpop.f32.mrb[8].mxu1 }
 0x6e3   : > { %1078 = vrot.lane.b32.xlu0 %v903_v21, %s1726_s20  ;;  %v1410_v1 = vpop.f32.mrb[9].mxu1 }
 0x6e6   : > { %v1069_v22 = vpop.f32.mrb[10].mxu1 }
 0x6e7   : > { %1082 = vrot.lane.b32.xlu1 %v1069_v22, %s1727_s11  ;;  %v1420_v23 = vpop.f32.mrb[11].mxu1  ;;  %s2048_s11 = scalar_lea.hbm %s2100_s7, %s1341_s23 }
 0x751   : > { %v1075_v24 = vpop.permute.xlu1 %1074 }
 0x752   : > { %v1085_v0 = vsel %vm412_vm2, %v2007_v39, %v1075_v24 }
 0x755   : > { %v1079_v25 = vpop.permute.xlu0 %1078 }
 0x756   : > { %v1087_v26 = vsel %vm1086_vm3, %v1085_v0, %v1079_v25 }
 0x759   : > { %v1083_v27 = vpop.permute.xlu1 %1082 }
 0x75a   : > { %v1089_v28 = vsel %vm1088_vm4, %v1087_v26, %v1083_v27 }
 0x75b   : > { %1430 = vmatmul.mubr.msk.f32.vlgmr.msra.gmra.mrb[6].mxu0 %vm335_vm1, %v1089_v28 }
 0x82e   : > { %v1170_v30 = vpop.f32.mrb[6].mxu0 }
 0x82f   : > { %v1171_v31 = vadd.f32 %v1336_v29, %v1170_v30  ;;  %v1431_v32 = vpop.f32.mrb[7].mxu0 }
 0x831   : > { %v1174_v33 = vadd.f32 %v1171_v31, %v1959_v8  ;;  %v1338_v8 = vld [vmem:[%s2098_s5] ss:$0 sm:$0xff] }
 0x833   : > { %v1177_v34 = vsel %vm335_vm1, %v1174_v33, 0.0 }
 0x834   : > { %1178 = vadd.xlane.f32.xlu0 %v1177_v34 }
 0x8c1   : > { %v1179_v35 = vpop.xlane.xlu0 %1178 }
 0x8c2   : > { %v1181_v36 = vmul.f32 0.03125, %v1179_v35 }
 0x8c4   : > { %v1182_v37 = vsub.f32 %v1174_v33, %v1181_v36 }
 0x8c6   : > { %v1183_v38 = vmul.f32 %v1182_v37, %v1182_v37 }
 0x8c8   : > { %v1184_v39 = vsel %vm335_vm1, %v1183_v38, 0.0 }
 0x8c9   : > { %1185 = vadd.xlane.f32.xlu1 %v1184_v39 }
 0x956   : > { %v1186_v40 = vpop.xlane.xlu1 %1185 }
 0x957   : > { %v1187_v41 = vmul.f32 0.03125, %v1186_v40 }
 0x959   : > { %v1188_v42 = vadd.f32 1e-05, %v1187_v41 }
 0x95b   : > { %1546 = vrsqrt.f32 %v1188_v42 }
 0x965   : > { %v1547_v43 = vpop.eup %1546 }
 0x966   : > { %v1190_v44 = vmul.f32 %v1547_v43, %v1182_v37 }
 0x968   : > { %v1197_v46 = vmul.f32 %v1338_v8, %v1190_v44 }
 0x96a   : > { %v1204_v47 = vadd.f32 %v1339_v45, %v1197_v46 }
 0x96c   : > { %v1205_v48 = vmax.f32 %v1204_v47, 0.0 }
 0x96e   : > { %1206 = vst.msk [vmem:[%s322_s29] sm:$0xff] %vm335_vm1, %v1205_v48 }
 0x96f   : > { %1647 = shalt.err (!%p1644_p2)
}
 0x970   : > { %s1648_s12 = scalar_lea.hbm %s2048_s11, 128  ;;  %s1652_s19 = scalar_lea.hbm %s2100_s7, 256 }
 0x971   : > { %p1649_p13 = scmp.ne.s32.totalorder %s2048_s11, %s1648_s12  ;;  %p1653_p4 = scmp.lt.u32.totalorder %s2048_s11, %s2100_s7 }
 0x972   : > { %p1654_p5 = scmp.lt.u32.totalorder %s1652_s19, %s1648_s12  ;;  %p1656_p11 = scmp.lt.u32.totalorder %s1648_s12, %s2048_s11 }
 0x973   : > { %p1650_p6 = pnand %p1649_p13, %p2114_p0 }
 0x974   : > { %p1655_p8 = por %p1654_p5, %p1653_p4 }
 0x975   : > { %p1651_p10 = pneg %p1650_p6 }
 0x976   : > { %p1657_p1 = por %p1656_p11, %p1655_p8 }
 0x978   : > { %p1658_p3 = pnand %p1657_p1, %p1651_p10 }
 0x97a   : > { %1661 = shalt.err (!%p1658_p3)
}
 0x97b   : > { %1454 = dma.vmem_to_hbm [thread:$0]  (%p2114_p0), %s2050_s30, 128, %s2048_s11, %s1208_s22  }
 0x97c PF: > { %s1233_s9 = sand.u32 1, %s1692_s24   ;;  %p2115_p7 = scmp.ne.s32.totalorder %s2105_s8, 0 }
 0x97d   : > { %p2116_p9 = scmp.ge.s32.totalorder %s1704_s27, 2  ;;  %s1234_s20 = scalar_lea.sflag [#allocation4], %s1233_s9 }
 0x97f   : > { %p1468_p12 = pnand %p2116_p9, %p2115_p7 }
 0x981   : > { %1687 = dma.done.wait (!%p1468_p12), %s1234_s20, 128  }
 0x982   : > { %1689 = vsyncadd (!%p1468_p12), %s1234_s20, 4294967168  ;;  %p21_p2 = scmp.ge.s32.totalorder %s1879_s13, 4   ;;  %s2117_s24 = smov %s1696_s25 }
 0x983   : > { %s2118_s25 = smov %s1700_s26  ;;  %s2119_s26 = smov %s1895_s17 }
 0x984   : > { %s2120_s27 = smov %s1879_s13  ;;  %23 = sbr.rel (!%p21_p2) target bundleno = 6 (0x6), region = 101 }
 0x98b   :  { %1239 = vsyncpa [#allocation3], 1 }
 0x98c   :  { %1241 = vsyncpa [#allocation3 + $0x1], 1 }
 0x98d   :  { %1242 = vsyncpa [#allocation6], 1 }
 0x98e   :  { %1243 = vsyncpa [#allocation4], 1 }
 0x98f   :  { %1245 = vsyncpa [#allocation4 + $0x1], 1 }

</bundles_post_ra>
